<compile_context>
chip_gen: v7x
topology: tpu7x:2x2x1
jax: 0.10.0
libtpu: 0.0.40
codegen_flags: <defaults>
</compile_context>

<pallas_src>
import jax
import jax.numpy as jnp
from jax.experimental import pallas as pl
from jax.experimental.pallas import tpu as pltpu


def _mlp_kernel(x_ref, w1_ref, b1_ref, w2_ref, b2_ref, o_ref):
    """Fused 2-layer MLP: relu(relu(x@W1+b1)@W2+b2), single VMEM-resident tile."""
    # Layer 1: bf16 x bf16 -> f32 accumulate (native bf16 MXU path).
    h = jnp.dot(x_ref[...], w1_ref[...], preferred_element_type=jnp.float32)
    h = jnp.maximum(h + b1_ref[...], 0.0)            # (B_pad, H_pad) f32, lane-dense
    # Layer 2 (tiny): f32 matmul + bias + ReLU into a lane-dense (B_pad, O_pad) slab.
    y = jnp.dot(h, w2_ref[...], preferred_element_type=jnp.float32)
    y = jnp.maximum(y + b2_ref[...], 0.0)
    o_ref[...] = y.astype(o_ref.dtype)


def _round_up(n, m):
    return ((n + m - 1) // m) * m


def cv_model_forward(x_nchw, w1, b1, w2, b2):
    """x_nchw: (B, C, H, W) float32. w1: (d_in, hidden), w2: (hidden, n_out).

    Returns (B, n_out) float32 = relu(relu(flatten(x) @ w1 + b1) @ w2 + b2).
    """
    B = x_nchw.shape[0]
    d_in, hidden = w1.shape
    n_out = w2.shape[1]

    # Sublane/lane-dense padded dims.
    b_pad = _round_up(B, 8)
    h_pad = _round_up(hidden, 128)
    o_pad = _round_up(n_out, 128)

    # nn.Flatten: (B, C, H, W) -> (B, C*H*W), row-major.  Cast the dominant
    # operands (x, W1) to bf16 to halve their DMA bytes; pad with zeros.
    x2d = x_nchw.reshape(B, d_in).astype(jnp.bfloat16)
    xp = jnp.zeros((b_pad, d_in), jnp.bfloat16).at[:B, :].set(x2d)
    w1p = (
        jnp.zeros((d_in, h_pad), jnp.bfloat16)
        .at[:, :hidden].set(w1.astype(jnp.bfloat16))
    )
    b1p = jnp.zeros((1, h_pad), jnp.float32).at[:, :hidden].set(b1)
    w2p = jnp.zeros((h_pad, o_pad), jnp.float32).at[:hidden, :n_out].set(w2)
    b2p = jnp.zeros((1, o_pad), jnp.float32).at[:, :n_out].set(b2)

    # No grid: single invocation, all operands whole-array resident in VMEM.
    # (If batch ever grows beyond toy size, add a "parallel" batch grid axis
    #  with weight index_maps returning (0, 0) so W1/W2 stay VMEM-resident.)
    vmem_spec = pl.BlockSpec(memory_space=pltpu.MemorySpace.VMEM)
    out_full = pl.pallas_call(
        _mlp_kernel,
        out_shape=jax.ShapeDtypeStruct((b_pad, o_pad), jnp.float32),
        in_specs=[vmem_spec] * 5,
        out_specs=vmem_spec,
    )(xp, w1p, b1p, w2p, b2p)

    # Slice away batch/lane padding to recover the real (B, nb_output) logits.
    return out_full[:B, :n_out]


def init_params(key, d_in, hidden, n_out):
    """Deterministic parameter init (Kaiming-uniform-ish, like nn.Linear)."""
    k1, k2, k3, k4 = jax.random.split(key, 4)
    lim1 = 1.0 / (d_in ** 0.5)
    lim2 = 1.0 / (hidden ** 0.5)
    # Stored as (in_features, out_features) so the kernel does x @ W.
    w1 = jax.random.uniform(k1, (d_in, hidden), jnp.float32, -lim1, lim1)
    b1 = jax.random.uniform(k2, (hidden,), jnp.float32, -lim1, lim1)
    w2 = jax.random.uniform(k3, (hidden, n_out), jnp.float32, -lim2, lim2)
    b2 = jax.random.uniform(k4, (n_out,), jnp.float32, -lim2, lim2)
    return w1, b1, w2, b2


if __name__ == "__main__":
    # Small shapes consistent with the module:
    #   image numel -> nb_input, new_nb_hidden -> hidden, len(classes) -> nb_output
    B, C, H, W = 2, 4, 16, 16          # x: (2, 4, 16, 16)  ->  nb_input = 1024
    HIDDEN = 32                        # new_nb_hidden
    N_OUT = 10                         # e.g. 10 dataset classes

    key = jax.random.PRNGKey(0)
    kx, kp = jax.random.split(key)
    x = jax.random.normal(kx, (B, C, H, W), jnp.float32)
    w1, b1, w2, b2 = init_params(kp, C * H * W, HIDDEN, N_OUT)

    out = cv_model_forward(x, w1, b1, w2, b2)
    out = jax.block_until_ready(out)

    # Pure-JAX reference matching the kernel's numerics (bf16 layer-1 inputs,
    # f32 accumulation/bias, f32 layer-2).
    x2d_ref = x.reshape(B, -1).astype(jnp.bfloat16)
    h_ref = jnp.dot(x2d_ref, w1.astype(jnp.bfloat16),
                    preferred_element_type=jnp.float32)
    h_ref = jnp.maximum(h_ref + b1, 0.0)
    ref = jnp.maximum(h_ref @ w2 + b2, 0.0)

    assert out.shape == (B, N_OUT)
    assert jnp.allclose(out, ref, atol=1e-3, rtol=1e-3), "mismatch vs reference"

    print("KERNEL_OK")
</pallas_src>

<mosaic_0001>
module attributes {stable_mosaic.version = 11 : i64} {
  func.func @_mlp_kernel(%arg0: memref<8x1024xbf16, #tpu.memory_space<vmem>>, %arg1: memref<1024x128xbf16, #tpu.memory_space<vmem>>, %arg2: memref<1x128xf32, #tpu.memory_space<vmem>>, %arg3: memref<128x128xf32, #tpu.memory_space<vmem>>, %arg4: memref<1x128xf32, #tpu.memory_space<vmem>>, %arg5: memref<8x128xf32, #tpu.memory_space<vmem>>) attributes {dimension_semantics = [], scalar_prefetch = 0 : i64, scratch_operands = 0 : i64, tpu.core_type = #tpu.core_type<tc>} {
    %c0 = arith.constant 0 : index
    %c0_0 = arith.constant 0 : index
    %0 = vector.load %arg0[%c0, %c0_0] : memref<8x1024xbf16, #tpu.memory_space<vmem>>, vector<8x1024xbf16>
    %c0_1 = arith.constant 0 : index
    %c0_2 = arith.constant 0 : index
    %1 = vector.load %arg1[%c0_1, %c0_2] : memref<1024x128xbf16, #tpu.memory_space<vmem>>, vector<1024x128xbf16>
    %cst = arith.constant dense<0.000000e+00> : vector<8x128xf32>
    %2 = tpu.matmul %0, %1, %cst {dimension_numbers = #tpu.dot_dimension_numbers<[1], [0], [0], [1], [0, 0, 1, 1], [], []>} : vector<8x1024xbf16>, vector<1024x128xbf16>, vector<8x128xf32> -> vector<8x128xf32>
    %c0_3 = arith.constant 0 : index
    %c0_4 = arith.constant 0 : index
    %3 = vector.load %arg2[%c0_3, %c0_4] : memref<1x128xf32, #tpu.memory_space<vmem>>, vector<1x128xf32>
    %4 = vector.broadcast %3 : vector<1x128xf32> to vector<8x128xf32>
    %5 = arith.addf %2, %4 : vector<8x128xf32>
    %cst_5 = arith.constant 0.000000e+00 : f32
    %6 = vector.broadcast %cst_5 : f32 to vector<8x128xf32>
    %7 = arith.maximumf %5, %6 : vector<8x128xf32>
    %c0_6 = arith.constant 0 : index
    %c0_7 = arith.constant 0 : index
    %8 = vector.load %arg3[%c0_6, %c0_7] : memref<128x128xf32, #tpu.memory_space<vmem>>, vector<128x128xf32>
    %cst_8 = arith.constant dense<0.000000e+00> : vector<8x128xf32>
    %9 = tpu.matmul %7, %8, %cst_8 {dimension_numbers = #tpu.dot_dimension_numbers<[1], [0], [0], [1], [0, 0, 1, 1], [], []>} : vector<8x128xf32>, vector<128x128xf32>, vector<8x128xf32> -> vector<8x128xf32>
    %c0_9 = arith.constant 0 : index
    %c0_10 = arith.constant 0 : index
    %10 = vector.load %arg4[%c0_9, %c0_10] : memref<1x128xf32, #tpu.memory_space<vmem>>, vector<1x128xf32>
    %11 = vector.broadcast %10 : vector<1x128xf32> to vector<8x128xf32>
    %12 = arith.addf %9, %11 : vector<8x128xf32>
    %cst_11 = arith.constant 0.000000e+00 : f32
    %13 = vector.broadcast %cst_11 : f32 to vector<8x128xf32>
    %14 = arith.maximumf %12, %13 : vector<8x128xf32>
    %c0_12 = arith.constant 0 : index
    %c0_13 = arith.constant 0 : index
    %15 = vector.load %arg5[%c0_12, %c0_13] : memref<8x128xf32, #tpu.memory_space<vmem>>, vector<8x128xf32>
    tpu.vector_store %arg5[%c0_12, %c0_13], %14 {strides = array<i32>} : memref<8x128xf32, #tpu.memory_space<vmem>>, vector<8x128xf32>,
    return
  }
}

</mosaic_0001>

<bundles_post_ra>
// kernel: tpu_custom_call.1
= control target key start
LH: loop header
LB: loop body
LE: loop exit
PB: predicated region body
PF: predicated region fallthrough
CT: control target
= control target key end

     0   :  { %10 = vsyncpa [#allocation3], 0  ;;  %s1394_s0 = inlined_call_operand.hbm [shape: bf16[8,1024], index: 0, kind: input, shape index: {}]   ;;  %s1395_s1 = inlined_call_operand.hbm [shape: bf16[1024,128], index: 1, kind: input, shape index: {}]   ;;  %s1396_s2 = inlined_call_operand.vmem [shape: f32[1,128], index: 2, kind: input, shape index: {}]   ;;  %s1397_s3 = inlined_call_operand.hbm [shape: f32[128,128], index: 3, kind: input, shape index: {}]   ;;  %s1398_s4 = inlined_call_operand.vmem [shape: f32[1,128], index: 4, kind: input, shape index: {}]   ;;  %s1399_s5 = inlined_call_operand.hbm [shape: f32[8,128], index: 5, kind: output, shape index: {}]  }
   0x1   :  { %11 = vsyncpa [#allocation6], 0 }
   0x2   :  { %12 = vsyncpa [#allocation4], 0  ;;  %s1299_s18 = smov [#allocation5]   ;;  %s1205_s22 = scalar_lea.hbm %s1395_s1, 8192 }
   0x3   :  { %s28_s19 = sshll.u32 %s1299_s18, 4  ;;  %p1206_p0 = scmp.ne.s32.totalorder %s1395_s1, %s1205_s22  ;;  %s29_s19 = int_to_ptr.vmem [resolvable:$true] %s28_s19 }
   0x4   :  { %p1209_p1 = scmp.lt.u32.totalorder %s1205_s22, %s1395_s1 }
   0x6   :  { %p1211_p2 = pnand %p1209_p1, %p1206_p0 }
   0x8   :  { %1214 = shalt.err (!%p1211_p2)
}
   0x9   :  { %s1215_s27 = scalar_lea.vmem %s29_s19, 8192  ;;  %p1220_p4 = scmp.lt.s32.totalorder %s29_s19, %s29_s19 }
   0xa   :  { %p1216_p3 = scmp.ne.s32.totalorder %s29_s19, %s1215_s27  ;;  %p1221_p5 = scmp.lt.s32.totalorder %s1215_s27, %s1215_s27 }
   0xc   :  { %p1222_p6 = por %p1221_p5, %p1220_p4 }
   0xe   :  { %p1223_p7 = pnand %p1222_p6, %p1216_p3 }
  0x10   :  { %1226 = shalt.err (!%p1223_p7)
}
  0x11   :  { %s1300_s28 = smov 64   ;;  %s1301_s29 = smov 4  }
  0x12   :  { %34 = dma.hbm_to_vmem [thread:$0]  %s1395_s1, 8192, %s29_s19, [#allocation6], %s1300_s28, %s1300_s28, %s1301_s29  }
  0x13   :  { %s1302_s7 = smov [#allocation2]   ;;  %s1303_s9 = smov [#allocation7]  }
  0x14   :  { %s19_s8 = sshll.u32 %s1302_s7, 4  ;;  %s42_s10 = sshll.u32 %s1303_s9, 4  ;;  %s20_s8 = int_to_ptr.vmem [resolvable:$true] %s19_s8  ;;  %s43_s10 = int_to_ptr.vmem [resolvable:$true] %s42_s10 }
  0x15   :  { %s1227_s13 = scalar_lea.hbm %s1394_s0, 512 }
  0x16   :  { %p1228_p8 = scmp.ne.s32.totalorder %s1394_s0, %s1227_s13  ;;  %p1231_p9 = scmp.lt.u32.totalorder %s1227_s13, %s1394_s0 }
  0x18   :  { %p1233_p10 = pnand %p1231_p9, %p1228_p8 }
  0x1a   :  { %1236 = shalt.err (!%p1233_p10)
}
  0x1b   :  { %s1237_s1 = scalar_lea.vmem %s20_s8, 512  ;;  %p1242_p12 = scmp.lt.s32.totalorder %s20_s8, %s20_s8 }
  0x1c   :  { %p1238_p11 = scmp.ne.s32.totalorder %s20_s8, %s1237_s1  ;;  %p1243_p13 = scmp.lt.s32.totalorder %s1237_s1, %s1237_s1 }
  0x1e   :  { %p1244_p0 = por %p1243_p13, %p1242_p12 }
  0x20   :  { %p1245_p1 = pnand %p1244_p0, %p1238_p11 }
  0x22   :  { %1248 = shalt.err (!%p1245_p1)
}
  0x23   :  { %22 = dma.hbm_to_vmem [thread:$0]  %s1394_s0, 512, %s20_s8, [#allocation3]  }
  0x24   :  { %s1249_s22 = scalar_lea.hbm %s1397_s3, 2048 }
  0x25   :  { %p1250_p2 = scmp.ne.s32.totalorder %s1397_s3, %s1249_s22  ;;  %p1253_p3 = scmp.lt.u32.totalorder %s1249_s22, %s1397_s3 }
  0x27   :  { %p1255_p4 = pnand %p1253_p3, %p1250_p2 }
  0x29   :  { %1258 = shalt.err (!%p1255_p4)
}
  0x2a   :  { %s1259_s27 = scalar_lea.vmem %s43_s10, 2048  ;;  %p1264_p6 = scmp.lt.s32.totalorder %s43_s10, %s43_s10 }
  0x2b   :  { %p1260_p5 = scmp.ne.s32.totalorder %s43_s10, %s1259_s27  ;;  %p1265_p7 = scmp.lt.s32.totalorder %s1259_s27, %s1259_s27 }
  0x2d   :  { %p1266_p8 = por %p1265_p7, %p1264_p6 }
  0x2f   :  { %p1267_p9 = pnand %p1266_p8, %p1260_p5 }
  0x31   :  { %1270 = shalt.err (!%p1267_p9)
}
  0x32   :  { %s1304_s0 = smov 128   ;;  %s1305_s28 = smov 8  }
  0x33   :  { %48 = dma.hbm_to_vmem [thread:$0]  %s1397_s3, 2048, %s43_s10, [#allocation6], %s1304_s0, %s1304_s0, %s1305_s28  }
  0x34   :  { %1293 = dma.done.wait [#allocation3], 512  }
  0x35   :  { %1294 = vsyncadd [#allocation3], 4294966784 }
  0x36   :  { %1295 = dma.done.wait [#allocation6], 10240  }
  0x37   :  { %1296 = vsyncadd [#allocation6], 4294957056  ;;  %v1133_v0 = vld [vmem:[#allocation5 + $0x40] sm:$0xff]   ;;  %v1137_v4 = vld [vmem:[#allocation5 + $0x48] sm:$0xff]   ;;  %vm1307_vm0 = vmmov 0   ;;  %s1309_s8 = smov [#allocation8]  }
  0x38   :  { %v1134_v1 = vld [vmem:[#allocation5 + $0xc0] sm:$0xff]   ;;  %958 = vmatprep.subr.bf16.mxu0 %v1133_v0  ;;  %v1138_v5 = vld [vmem:[#allocation5 + $0xc8] sm:$0xff]   ;;  %v1141_v8 = vld [vmem:[#allocation5 + $0x50] sm:$0xff]   ;;  %s874_s9 = sshll.u32 %s1309_s8, 4  ;;  %s875_s9 = int_to_ptr.vmem [resolvable:$true] %s874_s9 }
  0x39   :  { %v1135_v2 = vld [vmem:[#allocation5] sm:$0xff]   ;;  %980 = vmatprep.subr.bf16.mxu1 %v1134_v1  ;;  %v1139_v6 = vld [vmem:[#allocation5 + $0x8] sm:$0xff]   ;;  %v1142_v9 = vld [vmem:[#allocation5 + $0xd0] sm:$0xff]   ;;  %s1271_s10 = scalar_lea.vmem %s875_s9, 128  ;;  %p1276_p11 = scmp.lt.s32.totalorder %s875_s9, %s875_s9 }
  0x3a   :  { %v1136_v3 = vld [vmem:[#allocation5 + $0x80] sm:$0xff]   ;;  %959 = vmatpush3.bf16.msra.mxu0 %v1135_v2  ;;  %v1140_v7 = vld [vmem:[#allocation5 + $0x88] sm:$0xff]   ;;  %v1143_v10 = vld [vmem:[#allocation5 + $0x10] sm:$0xff]   ;;  %p1272_p10 = scmp.ne.s32.totalorder %s875_s9, %s1271_s10  ;;  %p1277_p12 = scmp.lt.s32.totalorder %s1271_s10, %s1271_s10 }
  0x3b   :  { %981 = vmatpush3.bf16.msra.mxu1 %v1136_v3  ;;  %960 = vmatprep.subr.bf16.mxu0 %v1137_v4  ;;  %v1144_v11 = vld [vmem:[#allocation5 + $0x90] sm:$0xff]   ;;  %v1145_v12 = vld [vmem:[#allocation5 + $0x58] sm:$0xff]   ;;  %v1149_v16 = vld [vmem:[#allocation5 + $0x60] sm:$0xff]  }
  0x3c   :  { %982 = vmatprep.subr.bf16.mxu1 %v1138_v5  ;;  %v1146_v13 = vld [vmem:[#allocation5 + $0xd8] sm:$0xff]   ;;  %v1150_v17 = vld [vmem:[#allocation5 + $0xe0] sm:$0xff]   ;;  %v1153_v20 = vld [vmem:[#allocation5 + $0x68] sm:$0xff]   ;;  %p1278_p13 = por %p1277_p12, %p1276_p11 }
  0x3d   :  { %v1147_v14 = vld [vmem:[#allocation5 + $0x18] sm:$0xff]   ;;  %v1151_v18 = vld [vmem:[#allocation5 + $0x20] sm:$0xff]   ;;  %v1154_v21 = vld [vmem:[#allocation5 + $0xe8] sm:$0xff]  }
  0x3e   :  { %961 = vmatpush3.bf16.msra.mxu0 %v1139_v6  ;;  %v1148_v15 = vld [vmem:[#allocation5 + $0x98] sm:$0xff]   ;;  %v1152_v19 = vld [vmem:[#allocation5 + $0xa0] sm:$0xff]   ;;  %v1155_v22 = vld [vmem:[#allocation5 + $0x28] sm:$0xff]   ;;  %p1279_p0 = pnand %p1278_p13, %p1272_p10 }
  0x3f   :  { %983 = vmatpush3.bf16.msra.mxu1 %v1140_v7  ;;  %962 = vmatprep.subr.bf16.mxu0 %v1141_v8  ;;  %v1156_v23 = vld [vmem:[#allocation5 + $0xa8] sm:$0xff]   ;;  %v1157_v24 = vld [vmem:[#allocation5 + $0x70] sm:$0xff]   ;;  %v1161_v28 = vld [vmem:[#allocation5 + $0x78] sm:$0xff]  }
  0x40   :  { %984 = vmatprep.subr.bf16.mxu1 %v1142_v9  ;;  %v1158_v25 = vld [vmem:[#allocation5 + $0xf0] sm:$0xff]   ;;  %v1162_v29 = vld [vmem:[#allocation5 + $0xf8] sm:$0xff]   ;;  %v61_v32 = vld [vmem:[#allocation2] sm:$0xff] }
  0x41   :  { %v1159_v26 = vld [vmem:[#allocation5 + $0x30] sm:$0xff]   ;;  %v1163_v30 = vld [vmem:[#allocation5 + $0x38] sm:$0xff]   ;;  %v62_v33 = vld [vmem:[#allocation2 + $0x8] sm:$0xff]  ;;  %v885_v34 = vcombine.low %v61_v32, %v61_v32  ;;  %v886_v35 = vcombine.high %v61_v32, %v61_v32 }
  0x42   :  { %963 = vmatpush3.bf16.msra.mxu0 %v1143_v10  ;;  %v1160_v27 = vld [vmem:[#allocation5 + $0xb0] sm:$0xff]   ;;  %v1164_v31 = vld [vmem:[#allocation5 + $0xb8] sm:$0xff]   ;;  %v887_v36 = vcombine.low %v62_v33, %v62_v33  ;;  %v888_v37 = vcombine.high %v62_v33, %v62_v33  ;;  %v1169_v38 = vld [vmem:[#allocation5 + $0x140] sm:$0xff]  }
  0x43   :  { %985 = vmatpush3.bf16.msra.mxu1 %v1144_v11  ;;  %964 = vmatprep.subr.bf16.mxu0 %v1145_v12  ;;  %v1170_v39 = vld [vmem:[#allocation5 + $0x1c0] sm:$0xff]   ;;  %v1173_v42 = vld [vmem:[#allocation5 + $0x148] sm:$0xff]   ;;  %v1177_v46 = vld [vmem:[#allocation5 + $0x150] sm:$0xff]  }
  0x44   :  { %986 = vmatprep.subr.bf16.mxu1 %v1146_v13  ;;  %644 = vmatprep.mubr.bf16.mxu0 %v886_v35  ;;  %v1171_v40 = vld [vmem:[#allocation5 + $0x100] sm:$0xff]   ;;  %v1174_v43 = vld [vmem:[#allocation5 + $0x1c8] sm:$0xff]   ;;  %v1178_v47 = vld [vmem:[#allocation5 + $0x1d0] sm:$0xff]  }
  0x45   :  { %684 = vmatprep.mubr.bf16.mxu1 %v888_v37  ;;  %v1172_v41 = vld [vmem:[#allocation5 + $0x180] sm:$0xff]   ;;  %v1175_v44 = vld [vmem:[#allocation5 + $0x108] sm:$0xff]   ;;  %v1179_v48 = vld [vmem:[#allocation5 + $0x110] sm:$0xff]   ;;  %v1308_v37 = vmov 0.0  }
  0x46   :  { %965 = vmatpush3.bf16.msra.mxu0 %v1147_v14  ;;  %v1176_v45 = vld [vmem:[#allocation5 + $0x188] sm:$0xff]   ;;  %v1180_v49 = vld [vmem:[#allocation5 + $0x190] sm:$0xff]   ;;  %v1181_v50 = vld [vmem:[#allocation5 + $0x158] sm:$0xff]  }
  0x47   :  { %987 = vmatpush3.bf16.msra.mxu1 %v1148_v15  ;;  %966 = vmatprep.subr.bf16.mxu0 %v1149_v16  ;;  %v1182_v51 = vld [vmem:[#allocation5 + $0x1d8] sm:$0xff]   ;;  %v1185_v54 = vld [vmem:[#allocation5 + $0x160] sm:$0xff]   ;;  %v1189_v58 = vld [vmem:[#allocation5 + $0x168] sm:$0xff]   ;;  %v1306_v15 = vmov 0.0|0.0  }
  0x48   :  { %988 = vmatprep.subr.bf16.mxu1 %v1150_v17  ;;  %v1183_v52 = vld [vmem:[#allocation5 + $0x118] sm:$0xff]   ;;  %v1186_v55 = vld [vmem:[#allocation5 + $0x1e0] sm:$0xff]   ;;  %v1190_v59 = vld [vmem:[#allocation5 + $0x1e8] sm:$0xff]  }
  0x49   :  { %v1184_v53 = vld [vmem:[#allocation5 + $0x198] sm:$0xff]   ;;  %v1187_v56 = vld [vmem:[#allocation5 + $0x120] sm:$0xff]   ;;  %v1191_v60 = vld [vmem:[#allocation5 + $0x128] sm:$0xff]  }
  0x4a   :  { %967 = vmatpush3.bf16.msra.mxu0 %v1151_v18  ;;  %v1188_v57 = vld [vmem:[#allocation5 + $0x1a0] sm:$0xff]   ;;  %v1192_v61 = vld [vmem:[#allocation5 + $0x1a8] sm:$0xff]   ;;  %v1193_v62 = vld [vmem:[#allocation5 + $0x170] sm:$0xff]  }
  0x4b   :  { %989 = vmatpush3.bf16.msra.mxu1 %v1152_v19  ;;  %968 = vmatprep.subr.bf16.mxu0 %v1153_v20  ;;  %v1194_v63 = vld [vmem:[#allocation5 + $0x1f0] sm:$0xff]   ;;  %v1197_v2 = vld [vmem:[#allocation5 + $0x178] sm:$0xff]   ;;  %v773_v12 = vld [vmem:[#allocation7] sm:$0xff] }
  0x4c   :  { %990 = vmatprep.subr.bf16.mxu1 %v1154_v21  ;;  %v1195_v0 = vld [vmem:[#allocation5 + $0x130] sm:$0xff]   ;;  %v1198_v3 = vld [vmem:[#allocation5 + $0x1f8] sm:$0xff]   ;;  %v774_v13 = vld [vmem:[#allocation7 + $0x8] sm:$0xff] }
  0x4d   :  { %v1196_v1 = vld [vmem:[#allocation5 + $0x1b0] sm:$0xff]   ;;  %v1199_v4 = vld [vmem:[#allocation5 + $0x138] sm:$0xff]   ;;  %v1099_v16 = vpack.c.bf16 %v774_v13, %v773_v12  ;;  %v777_v19 = vld [vmem:[#allocation7 + $0x20] sm:$0xff] }
  0x4e   :  { %969 = vmatpush3.bf16.msra.mxu0 %v1155_v22  ;;  %v1200_v5 = vld [vmem:[#allocation5 + $0x1b8] sm:$0xff]   ;;  %v63_v6 = vld [vmem:[#allocation2 + $0x10] sm:$0xff]  ;;  %v778_v20 = vld [vmem:[#allocation7 + $0x28] sm:$0xff] }
  0x4f   :  { %991 = vmatpush3.bf16.msra.mxu1 %v1156_v23  ;;  %970 = vmatprep.subr.bf16.mxu0 %v1157_v24  ;;  %v889_v7 = vcombine.low %v63_v6, %v63_v6  ;;  %v890_v8 = vcombine.high %v63_v6, %v63_v6  ;;  %v64_v9 = vld [vmem:[#allocation2 + $0x18] sm:$0xff]  ;;  %v775_v14 = vld [vmem:[#allocation7 + $0x10] sm:$0xff]  ;;  %v1105_v21 = vpack.c.bf16 %v778_v20, %v777_v19  ;;  %v786_v32 = vld [vmem:[#allocation7 + $0x68] sm:$0xff] }
  0x50   :  { %992 = vmatprep.subr.bf16.mxu1 %v1158_v25  ;;  %v891_v10 = vcombine.low %v64_v9, %v64_v9  ;;  %v892_v11 = vcombine.high %v64_v9, %v64_v9  ;;  %v776_v17 = vld [vmem:[#allocation7 + $0x18] sm:$0xff]  ;;  %v779_v22 = vld [vmem:[#allocation7 + $0x30] sm:$0xff]  ;;  %v781_v25 = vld [vmem:[#allocation7 + $0x40] sm:$0xff] }
  0x51   :  { %v1102_v18 = vpack.c.bf16 %v776_v17, %v775_v14  ;;  %v780_v23 = vld [vmem:[#allocation7 + $0x38] sm:$0xff] }
  0x52   :  { %971 = vmatpush3.bf16.msra.mxu0 %v1159_v26  ;;  %v1108_v24 = vpack.c.bf16 %v780_v23, %v779_v22  ;;  %v782_v26 = vld [vmem:[#allocation7 + $0x48] sm:$0xff]  ;;  %v788_v35 = vld [vmem:[#allocation7 + $0x78] sm:$0xff] }
  0x53   :  { %993 = vmatpush3.bf16.msra.mxu1 %v1160_v27  ;;  %972 = vmatprep.subr.bf16.mxu0 %v1161_v28  ;;  %v1111_v27 = vpack.c.bf16 %v782_v26, %v781_v25  ;;  %v783_v28 = vld [vmem:[#allocation7 + $0x50] sm:$0xff] }
  0x54   :  { %994 = vmatprep.subr.bf16.mxu1 %v1162_v29  ;;  %v784_v29 = vld [vmem:[#allocation7 + $0x58] sm:$0xff] }
  0x56   :  { %973 = vmatpush3.bf16.msra.mxu0 %v1163_v30  ;;  %v1114_v30 = vpack.c.bf16 %v784_v29, %v783_v28 }
  0x57   :  { %995 = vmatpush3.bf16.msra.mxu1 %v1164_v31  ;;  %1002 = vmatprep.subr.bf16.mxu0 %v1169_v38  ;;  %v785_v31 = vld [vmem:[#allocation7 + $0x60] sm:$0xff] }
  0x58   :  { %1024 = vmatprep.subr.bf16.mxu1 %v1170_v39  ;;  %v1117_v33 = vpack.c.bf16 %v786_v32, %v785_v31 }
  0x59   :  { %645 = vmatmul.mubr.bf16.vlgmr.msra.gmra.mrb[0].mxu0 %v885_v34  ;;  %v787_v34 = vld [vmem:[#allocation7 + $0x70] sm:$0xff] }
  0x5a   :  { %685 = vmatmul.mubr.bf16.vlgmr.msra.gmra.mrb[0].mxu1 %v887_v36  ;;  %1003 = vmatpush3.bf16.msra.mxu0 %v1171_v40  ;;  %v1120_v36 = vpack.c.bf16 %v788_v35, %v787_v34  ;;  %v884_v40 = vld [vmem:[%s1396_s2] ss:$0 sm:$0xff] }
  0x5b   :  { %1025 = vmatpush3.bf16.msra.mxu1 %v1172_v41  ;;  %1004 = vmatprep.subr.bf16.mxu0 %v1173_v42 }
  0x5c   :  { %1026 = vmatprep.subr.bf16.mxu1 %v1174_v43  ;;  %724 = vmatprep.mubr.bf16.mxu0 %v890_v8 }
  0x5d   :  { %764 = vmatprep.mubr.bf16.mxu1 %v892_v11 }
  0x5e   :  { %1005 = vmatpush3.bf16.msra.mxu0 %v1175_v44 }
  0x5f   :  { %1027 = vmatpush3.bf16.msra.mxu1 %v1176_v45  ;;  %1006 = vmatprep.subr.bf16.mxu0 %v1177_v46 }
  0x60   :  { %1028 = vmatprep.subr.bf16.mxu1 %v1178_v47 }
  0x62   :  { %1007 = vmatpush3.bf16.msra.mxu0 %v1179_v48 }
  0x63   :  { %1029 = vmatpush3.bf16.msra.mxu1 %v1180_v49  ;;  %1008 = vmatprep.subr.bf16.mxu0 %v1181_v50 }
  0x64   :  { %1030 = vmatprep.subr.bf16.mxu1 %v1182_v51 }
  0x66   :  { %1009 = vmatpush3.bf16.msra.mxu0 %v1183_v52 }
  0x67   :  { %1031 = vmatpush3.bf16.msra.mxu1 %v1184_v53  ;;  %1010 = vmatprep.subr.bf16.mxu0 %v1185_v54 }
  0x68   :  { %1032 = vmatprep.subr.bf16.mxu1 %v1186_v55 }
  0x6a   :  { %1011 = vmatpush3.bf16.msra.mxu0 %v1187_v56 }
  0x6b   :  { %1033 = vmatpush3.bf16.msra.mxu1 %v1188_v57  ;;  %1012 = vmatprep.subr.bf16.mxu0 %v1189_v58 }
  0x6c   :  { %1034 = vmatprep.subr.bf16.mxu1 %v1190_v59 }
  0x6e   :  { %1013 = vmatpush3.bf16.msra.mxu0 %v1191_v60 }
  0x6f   :  { %1035 = vmatpush3.bf16.msra.mxu1 %v1192_v61  ;;  %1014 = vmatprep.subr.bf16.mxu0 %v1193_v62 }
  0x70   :  { %1036 = vmatprep.subr.bf16.mxu1 %v1194_v63 }
  0x72   :  { %1015 = vmatpush3.bf16.msra.mxu0 %v1195_v0  ;;  %v957_v0 = vld [vmem:[%s1398_s4] ss:$0 sm:$0xff] }
  0x73   :  { %1037 = vmatpush3.bf16.msra.mxu1 %v1196_v1  ;;  %1016 = vmatprep.subr.bf16.mxu0 %v1197_v2 }
  0x74   :  { %1038 = vmatprep.subr.bf16.mxu1 %v1198_v3 }
  0x76   :  { %1017 = vmatpush3.bf16.msra.mxu0 %v1199_v4 }
  0x77   :  { %1039 = vmatpush3.bf16.msra.mxu1 %v1200_v5  ;;  %1098 = vmatprep.subr.bf16.mxu0 %v1306_v15 }
  0x79   :  { %725 = vmatmul.mubr.bf16.vlgmr.msra.gmra.mrb[4].mxu0 %v889_v7 }
  0x7a   :  { %765 = vmatmul.mubr.bf16.vlgmr.msra.gmra.mrb[4].mxu1 %v891_v10  ;;  %1100 = vmatpush3.bf16.msra.mxu0 %v1099_v16 }
  0x7b   :  { %1101 = vmatprep.subr.bf16.mxu0 %v1306_v15  ;;  %1095 = vmatprep.mubr.msk.f32.mxu0 %vm1307_vm0, %v1308_v37 }
  0x7e   :  { %1103 = vmatpush3.bf16.msra.mxu0 %v1102_v18 }
  0x7f   :  { %1104 = vmatprep.subr.bf16.mxu0 %v1306_v15 }
  0x82   :  { %1106 = vmatpush3.bf16.msra.mxu0 %v1105_v21 }
  0x83   :  { %1107 = vmatprep.subr.bf16.mxu0 %v1306_v15 }
  0x86   :  { %1109 = vmatpush3.bf16.msra.mxu0 %v1108_v24 }
  0x87   :  { %1110 = vmatprep.subr.bf16.mxu0 %v1306_v15 }
  0x8a   :  { %1112 = vmatpush3.bf16.msra.mxu0 %v1111_v27 }
  0x8b   :  { %1113 = vmatprep.subr.bf16.mxu0 %v1306_v15 }
  0x8e   :  { %1115 = vmatpush3.bf16.msra.mxu0 %v1114_v30 }
  0x8f   :  { %1116 = vmatprep.subr.bf16.mxu0 %v1306_v15 }
  0x92   :  { %1118 = vmatpush3.bf16.msra.mxu0 %v1117_v33 }
  0x93   :  { %1119 = vmatprep.subr.bf16.mxu0 %v1306_v15 }
  0x96   :  { %1121 = vmatpush3.bf16.msra.mxu0 %v1120_v36 }
 0x12c   :  { %v974_v38 = vpop.f32.mrb[0].mxu0 }
 0x12d   :  { %v996_v39 = vpop.f32.mrb[0].mxu1  ;;  %v975_v41 = vpop.f32.mrb[1].mxu0 }
 0x12e   :  { %v997_v42 = vpop.f32.mrb[1].mxu1  ;;  %v976_v43 = vadd.f32 %v975_v41, %v974_v38  ;;  %v977_v45 = vpop.f32.mrb[2].mxu0 }
 0x12f   :  { %v998_v44 = vadd.f32 %v997_v42, %v996_v39  ;;  %v999_v46 = vpop.f32.mrb[2].mxu1  ;;  %v978_v47 = vpop.f32.mrb[3].mxu0 }
 0x130   :  { %v1000_v48 = vpop.f32.mrb[3].mxu1  ;;  %v647_v49 = vadd.f32 %v976_v43, %v884_v40 }
 0x132   :  { %v687_v50 = vadd.f32 %v998_v44, %v647_v49 }
 0x14c   :  { %v1018_v51 = vpop.f32.mrb[4].mxu0 }
 0x14d   :  { %v1040_v52 = vpop.f32.mrb[4].mxu1  ;;  %v1019_v53 = vpop.f32.mrb[5].mxu0 }
 0x14e   :  { %v1041_v54 = vpop.f32.mrb[5].mxu1  ;;  %v1020_v55 = vadd.f32 %v1019_v53, %v1018_v51  ;;  %v1021_v57 = vpop.f32.mrb[6].mxu0 }
 0x14f   :  { %v1042_v56 = vadd.f32 %v1041_v54, %v1040_v52  ;;  %v1043_v58 = vpop.f32.mrb[6].mxu1  ;;  %v1022_v59 = vpop.f32.mrb[7].mxu0 }
 0x150   :  { %v1044_v60 = vpop.f32.mrb[7].mxu1  ;;  %v727_v61 = vadd.f32 %v1020_v55, %v687_v50 }
 0x152   :  { %v767_v62 = vadd.f32 %v1042_v56, %v727_v61 }
 0x154   :  { %v772_v63 = vmax.f32 %v767_v62, 0.0 }
 0x156   :  { %1096 = vmatmul.mubr.f32.vlgmr.msra.gmra.mrb[8].mxu0 %v772_v63 }
 0x229   :  { %v862_v1 = vpop.f32.mrb[8].mxu0 }
 0x22a   :  { %v863_v2 = vadd.f32 %v957_v0, %v862_v1  ;;  %v1097_v3 = vpop.f32.mrb[9].mxu0 }
 0x22c   :  { %v866_v4 = vmax.f32 %v863_v2, 0.0 }
 0x22e   :  { %867 = vst [vmem:[#allocation8] sm:$0xff] %v866_v4 }
 0x22f   :  { %1282 = shalt.err (!%p1279_p0)
}
 0x230   :  { %s1283_s13 = scalar_lea.hbm %s1399_s5, 128 }
 0x231   :  { %p1284_p1 = scmp.ne.s32.totalorder %s1399_s5, %s1283_s13  ;;  %p1287_p2 = scmp.lt.u32.totalorder %s1283_s13, %s1399_s5 }
 0x233   :  { %p1289_p3 = pnand %p1287_p2, %p1284_p1 }
 0x235   :  { %1292 = shalt.err (!%p1289_p3)
}
 0x236   :  { %877 = dma.vmem_to_hbm [thread:$0]  %s875_s9, 128, %s1399_s5, [#allocation4]  }
 0x237   :  { %1297 = dma.done.wait [#allocation4], 128  }
 0x238   :  { %1298 = vsyncadd [#allocation4], 4294967168 }
 0x239   :  { %881 = vsyncpa [#allocation3], 1 }
 0x23a   :  { %882 = vsyncpa [#allocation6], 1 }
 0x23b   :  { %883 = vsyncpa [#allocation4], 1 }

</bundles_post_ra>
